<compile_context>
chip_gen: v6e
topology: v6e:2x2x1
jax: 0.10.0
libtpu: 0.0.40
codegen_flags: <defaults>
</compile_context>

<pallas_src>
import functools
import math

import jax
import jax.numpy as jnp
from jax.experimental import pallas as pl
from jax.experimental.pallas import tpu as pltpu


def _rotary_kernel(cst_ref, out_ref, *, block_rows: int, k: int):
    """out[r, j] = global_row(r, j) * C[j].

    global_row(r, j) = (grid_offset + r) * k + fold[j], where fold[j] = j // width
    (precomputed on the host as cst[1]), and C[j] = inv_freq_dup[j % width] / scale
    (cst[0]).  Row indices stay exact integers in f32 (asserted seq_len < 2^24),
    so the only rounding difference vs. the reference is the order of the /scale.
    """
    base = pl.program_id(0) * (block_rows * k)
    slab = jax.lax.broadcasted_iota(jnp.int32, out_ref.shape, 0) * k + base
    row = slab.astype(jnp.float32) + cst_ref[1:2, :]          # exact global row index
    out_ref[...] = (row * cst_ref[0:1, :]).astype(out_ref.dtype)


def rotary_embedding(seq_len: int, dim: int, scale: float = 40.0,
                     block_rows: int | None = None,
                     out_dtype=jnp.float32) -> jnp.ndarray:
    """Pallas-backed equivalent of RotaryEmbedding(dim, scale).forward(seq_len)."""
    assert dim % 2 == 0, "Dimension must be even for rotary embeddings"
    assert seq_len >= 1
    assert seq_len < (1 << 24), "row index would lose f32 integer precision"
    half = dim // 2

    # Deterministic "buffer" init, identical to the PyTorch __init__.
    exponents = jnp.arange(0, half, 2, dtype=jnp.float32) / half
    inv_freq = 1.0 / (10000.0 ** exponents)                    # (n_freq,)
    n_freq = int(inv_freq.shape[0])
    width = 2 * n_freq                                         # output last dim

    # Lane-dense folding: k output rows per slab row so W = k*width % 128 == 0.
    k = 1 if width % 128 == 0 else 128 // math.gcd(width, 128)
    W = k * width

    # Single (2, W) constant input: [scaled duplicated freqs ; per-fold offsets].
    inv_scaled = jnp.concatenate([inv_freq, inv_freq]) / jnp.float32(scale)  # (width,)
    c = jnp.tile(inv_scaled, k)                                              # (W,)
    fold = jnp.repeat(jnp.arange(k, dtype=jnp.float32), width)               # (W,)
    cst = jnp.stack([c, fold], axis=0)                                       # (2, W)

    # Slab-row space: one slab row == k output rows.
    s_slab = -(-seq_len // k)

    if block_rows is None:
        # Size blocks by bytes only (~8 MiB per output block; x2 buffering).
        budget_bytes = 8 * 1024 * 1024
        max_rows = max(8, (budget_bytes // (W * 4)) // 8 * 8)
        # Keep >= 2 grid steps whenever splittable (v7x has 2 TCs on "parallel").
        if s_slab >= 16:
            max_rows = min(max_rows, (((s_slab + 1) // 2) + 7) // 8 * 8)

        if s_slab < 16:
            block_rows = s_slab                       # single full-extent block
        elif s_slab % 8 == 0:
            # Prefer a multiple-of-8 divisor of s_slab -> zero row padding, so
            # the wrapper reshape/slice is a pure view.
            best = None
            for d in range(max_rows, 7, -8):
                if s_slab % d == 0:
                    best = d
                    break
            if best is not None and best * 4 >= min(max_rows, s_slab):
                block_rows = best
            else:                                     # only tiny divisors exist
                block_rows = min(max_rows, ((s_slab + 7) // 8) * 8)
        else:
            block_rows = min(max_rows, ((s_slab + 7) // 8) * 8)

    # Normalize to a legal block shape: full extent, or a multiple of 8 rows.
    block_rows = max(1, min(block_rows, s_slab))
    if block_rows < s_slab and block_rows % 8 != 0:
        block_rows = min(((block_rows + 7) // 8) * 8, s_slab)

    grid = -(-s_slab // block_rows)
    padded_slab = grid * block_rows

    out_itemsize = jnp.dtype(out_dtype).itemsize
    block_bytes = block_rows * W * out_itemsize
    # 2x double-buffered output block + 2x tiny constant input + margin.
    need_bytes = 2 * block_bytes + 2 * (2 * W * 4) + (1 << 20)
    vmem_limit = need_bytes if need_bytes > (14 << 20) else None  # v5e default is 16 MiB

    out = pl.pallas_call(
        functools.partial(_rotary_kernel, block_rows=block_rows, k=k),
        out_shape=jax.ShapeDtypeStruct((padded_slab, W), out_dtype),
        grid=(grid,),
        in_specs=[pl.BlockSpec((2, W), lambda i: (0, 0))],
        out_specs=pl.BlockSpec((block_rows, W), lambda i: (i, 0)),
        compiler_params=pltpu.CompilerParams(
            dimension_semantics=("parallel",),
            vmem_limit_bytes=vmem_limit,
        ),
        cost_estimate=pl.CostEstimate(
            flops=2 * padded_slab * W,
            transcendentals=0,
            bytes_accessed=padded_slab * W * out_itemsize + 2 * W * 4,
        ),
    )(cst)

    # Un-fold the k-row lane packing. When there is no padding this is a pure
    # view; otherwise strip the padded rows.
    table = out.reshape(padded_slab * k, width)
    if padded_slab * k == seq_len:
        return table
    return table[:seq_len]


def _reference(seq_len: int, dim: int, scale: float = 40.0) -> jnp.ndarray:
    half = dim // 2
    exponents = jnp.arange(0, half, 2, dtype=jnp.float32) / half
    inv_freq = 1.0 / (10000.0 ** exponents)
    t = jnp.arange(seq_len, dtype=jnp.float32) / scale
    freqs = jnp.einsum("i,j->ij", t, inv_freq)
    return jnp.concatenate([freqs, freqs], axis=-1)


if __name__ == "__main__":
    _ = jax.random.PRNGKey(0)   # deterministic setup (no random params needed)

    # Small shape consistent with the module: hidden dim = 32, seq_len = 8.
    seq_len, dim = 8, 32
    out = jax.block_until_ready(rotary_embedding(seq_len, dim))
    ref = _reference(seq_len, dim)
    assert out.shape == ref.shape, (out.shape, ref.shape)
    assert out.dtype == jnp.float32, out.dtype
    assert jnp.allclose(out, ref, atol=1e-6, rtol=1e-6), "mismatch vs reference"

    # Multi-block grid + row-padding path with tiny data
    # (seq=200, dim=32 -> k=8, 25 slab rows, block_rows=8 -> 4 grid steps).
    out2 = jax.block_until_ready(rotary_embedding(200, 32, block_rows=8))
    ref2 = _reference(200, 32)
    assert out2.shape == ref2.shape, (out2.shape, ref2.shape)
    assert jnp.allclose(out2, ref2, atol=1e-6, rtol=1e-6), "mismatch (grid path)"

    # Auto-sized path: >= 2 grid steps, zero padding, pure-view return
    # (seq=128, dim=64 -> k=4, 32 slab rows, block_rows=16, grid=2).
    out3 = jax.block_until_ready(rotary_embedding(128, 64))
    ref3 = _reference(128, 64)
    assert out3.shape == ref3.shape, (out3.shape, ref3.shape)
    assert jnp.allclose(out3, ref3, atol=1e-6, rtol=1e-6), "mismatch (auto path)"

    print("KERNEL_OK")
</pallas_src>

<mosaic_0001>
module attributes {stable_mosaic.version = 11 : i64} {
  func.func @_rotary_kernel(%arg0: i32, %arg1: memref<2x128xf32, #tpu.memory_space<vmem>>, %arg2: memref<1x128xf32, #tpu.memory_space<vmem>>) attributes {dimension_semantics = [#tpu.dimension_semantics<parallel>], iteration_bounds = array<i64: 1>, scalar_prefetch = 0 : i64, scratch_operands = 0 : i64, tpu.core_type = #tpu.core_type<tc>, window_params = [{pipeline_mode = #tpu.pipeline_mode<synchronous>, transform_indices = @transform_0, window_bounds = array<i64: 2, 128>}, {transform_indices = @transform_1, window_bounds = array<i64: 1, 128>}]} {
    %c8_i32 = arith.constant 8 : i32
    %0 = arith.muli %arg0, %c8_i32 : i32
    %1 = tpu.iota {dimensions = array<i32: 0>} : vector<1x128xi32>
    %c8_i32_0 = arith.constant 8 : i32
    %2 = vector.broadcast %c8_i32_0 : i32 to vector<1x128xi32>
    %3 = arith.muli %1, %2 : vector<1x128xi32>
    %4 = vector.broadcast %0 : i32 to vector<1x128xi32>
    %5 = arith.addi %3, %4 : vector<1x128xi32>
    %6 = arith.sitofp %5 : vector<1x128xi32> to vector<1x128xf32>
    %c1 = arith.constant 1 : index
    %c0 = arith.constant 0 : index
    %7 = vector.load %arg1[%c1, %c0] : memref<2x128xf32, #tpu.memory_space<vmem>>, vector<1x128xf32>
    %8 = arith.addf %6, %7 : vector<1x128xf32>
    %c0_1 = arith.constant 0 : index
    %c0_2 = arith.constant 0 : index
    %9 = vector.load %arg1[%c0_1, %c0_2] : memref<2x128xf32, #tpu.memory_space<vmem>>, vector<1x128xf32>
    %10 = arith.mulf %8, %9 : vector<1x128xf32>
    %c0_3 = arith.constant 0 : index
    %c0_4 = arith.constant 0 : index
    %11 = vector.load %arg2[%c0_3, %c0_4] : memref<1x128xf32, #tpu.memory_space<vmem>>, vector<1x128xf32>
    tpu.vector_store %arg2[%c0_3, %c0_4], %10 {strides = array<i32>} : memref<1x128xf32, #tpu.memory_space<vmem>>, vector<1x128xf32>,
    return
  }
  func.func @transform_0(%arg0: i32) -> (i32, i32) {
    %c0_i32 = arith.constant 0 : i32
    %c0_i32_0 = arith.constant 0 : i32
    %c0_i32_1 = arith.constant 0 : i32
    return %c0_i32, %c0_i32_0 : i32, i32
  }
  func.func @transform_1(%arg0: i32) -> (i32, i32) {
    %c0_i32 = arith.constant 0 : i32
    %c0_i32_0 = arith.constant 0 : i32
    return %arg0, %c0_i32 : i32, i32
  }
}

</mosaic_0001>

<bundles_post_ra>
// kernel: tpu_custom_call.1
= control target key start
LH: loop header
LB: loop body
LE: loop exit
PB: predicated region body
PF: predicated region fallthrough
CT: control target
= control target key end

     0   :  { %6 = vsyncpa [#allocation3], 0  ;;  %s112_s0 = inlined_call_operand.hbm [shape: f32[2,128], index: 0, kind: input, shape index: {}]   ;;  %s113_s1 = inlined_call_operand.hbm [shape: f32[1,128], index: 1, kind: output, shape index: {}]  }
   0x1   :  { %7 = vsyncpa [#allocation4], 0  ;;  %s94_s6 = smov [#allocation2]  }
   0x2   :  { %s14_s7 = sshll.u32 %s94_s6, 4  ;;  %s15_s7 = int_to_ptr.vmem [resolvable:$true] %s14_s7 }
   0x3   :  { %s58_s8 = scalar_lea.vmem %s15_s7, 32  ;;  %p63_p1 = scmp.lt.s32.totalorder %s15_s7, %s15_s7 }
   0x4   :  { %p59_p0 = scmp.ne.s32.totalorder %s15_s7, %s58_s8  ;;  %p64_p2 = scmp.lt.s32.totalorder %s58_s8, %s58_s8 }
   0x6   :  { %p65_p3 = por %p64_p2, %p63_p1 }
   0x8   :  { %p66_p4 = pnand %p65_p3, %p59_p0 }
   0xa   :  { %69 = shalt.err (!%p66_p4)
}
   0xb   :  { %17 = dma.hbm_to_vmem [thread:$0]  %s112_s0, 32, %s15_s7, [#allocation3]  }
   0xc   :  { %90 = dma.done.wait [#allocation3], 32  }
   0xd   :  { %91 = vsyncadd [#allocation3], 4294967264  ;;  %v22_v0 = vlaneseq  ;;  %v28_v4 = vld [vmem:[#allocation2 + $0x1] sm:$0x1]  ;;  %v30_v5 = vld [vmem:[#allocation2] sm:$0x1] }
   0xe   :  { %s95_s11 = smov [#allocation5]  }
   0xf   :  { %v23_v1 = vshrl.u32 %v22_v0, 7  ;;  %s39_s12 = sshll.u32 %s95_s11, 4  ;;  %s40_s12 = int_to_ptr.vmem [resolvable:$true] %s39_s12 }
  0x10   :  { %s70_s13 = scalar_lea.vmem %s40_s12, 16  ;;  %s74_s14 = scalar_lea.vmem %s40_s12, 32 }
  0x11   :  { %v24_v2 = vmul.u32 8, %v23_v1  ;;  %p71_p5 = scmp.ne.s32.totalorder %s40_s12, %s70_s13  ;;  %p75_p6 = scmp.lt.s32.totalorder %s40_s12, %s40_s12 }
  0x12   :  { %p76_p7 = scmp.lt.s32.totalorder %s74_s14, %s70_s13 }
  0x13   :  { %v27_v3 = vcvt.s32.f32 %v24_v2 }
  0x14   :  { %p77_p8 = por %p76_p7, %p75_p6 }
  0x15   :  { %v29_v6 = vadd.f32 %v28_v4, %v27_v3 }
  0x16   :  { %p78_p9 = pnand %p77_p8, %p71_p5 }
  0x17   :  { %v31_v7 = vmul.f32 %v30_v5, %v29_v6 }
  0x19   :  { %32 = vst [vmem:[#allocation5] sm:$0x1] %v31_v7 }
  0x1a   :  { %81 = shalt.err (!%p78_p9)
}
  0x1b   :  { %42 = dma.vmem_to_hbm [thread:$0]  %s40_s12, 16, %s113_s1, [#allocation4]  }
  0x1c   :  { %92 = dma.done.wait [#allocation4], 16  }
  0x1d   :  { %93 = vsyncadd [#allocation4], 4294967280 }
  0x1e   :  { %46 = vsyncpa [#allocation3], 1 }
  0x1f   :  { %47 = vsyncpa [#allocation4], 1 }

</bundles_post_ra>
